<compile_context>
chip_gen: v7x
topology: tpu7x:2x2x1
jax: 0.10.0
libtpu: 0.0.40
codegen_flags: <defaults>
</compile_context>

<pallas_src>
import functools

import jax
import jax.numpy as jnp
from jax.experimental import pallas as pl
from jax.experimental.pallas import tpu as pltpu


def _round_up(x: int, m: int) -> int:
    return (x + m - 1) // m * m


# --------------------------------------------------------------------------
# Kernels
# --------------------------------------------------------------------------

def _ffn_step(x_ref, w1_ref, b1_ref, w2_ref):
    # x_ref: (tm, Dp) bf16, w1_ref: (Dp, tf) bf16, b1_ref: (1, tf) f32,
    # w2_ref: (tf, Dp) bf16.  Returns the f32 partial (tm, Dp) contribution.
    h = jnp.dot(x_ref[...], w1_ref[...], preferred_element_type=jnp.float32)
    h = jnp.maximum(h + b1_ref[...], 0.0)          # bias + ReLU in f32 (VPU)
    # dropout == identity (inference).
    return jnp.dot(h.astype(w2_ref.dtype), w2_ref[...],
                   preferred_element_type=jnp.float32)


def ffn_kernel_f32_out(x_ref, w1_ref, b1_ref, w2_ref, b2_ref, o_ref):
    """f32 output: accumulate the d_ff reduction directly into the resident
    output block (no scratch -> saves tm*Dp*4 B of VMEM)."""
    kf = pl.program_id(1)

    @pl.when(kf == 0)
    def _init():
        # Fold the second bias into the accumulator init.
        o_ref[...] = jnp.broadcast_to(b2_ref[...], o_ref.shape)

    o_ref[...] += _ffn_step(x_ref, w1_ref, b1_ref, w2_ref)


def ffn_kernel_cast_out(x_ref, w1_ref, b1_ref, w2_ref, b2_ref, o_ref, acc_ref):
    """Non-f32 output (e.g. bf16): accumulate in an f32 scratch, cast once."""
    kf = pl.program_id(1)

    @pl.when(kf == 0)
    def _init():
        acc_ref[...] = jnp.broadcast_to(b2_ref[...], acc_ref.shape)

    acc_ref[...] += _ffn_step(x_ref, w1_ref, b1_ref, w2_ref)

    @pl.when(kf == pl.num_programs(1) - 1)
    def _finalize():
        o_ref[...] = acc_ref[...].astype(o_ref.dtype)


# --------------------------------------------------------------------------
# Tile selection (trace-time, per chip generation)
# --------------------------------------------------------------------------

@functools.lru_cache(maxsize=None)
def _vmem_capacity_bytes() -> int:
    try:
        return int(pltpu.get_tpu_info().vmem_capacity_bytes)
    except Exception:
        return 64 * 1024 * 1024        # conservative fallback (v7x per-TC)


def _choose_tiles(M, Dp, Fp, out_bytes, tm=None, tf=None):
    vmem_cap = _vmem_capacity_bytes()
    big_vmem = vmem_cap >= (96 << 20)            # v5e/v6e: 128 MiB; v7x: 64 MiB
    vmem_limit = min(int(vmem_cap * 0.8), 112 * 1024 * 1024)
    budget = int(vmem_limit * 0.85)              # headroom for compiler scratch

    # d_ff chunk: multiple of 128 that divides Fp (no dead zero columns).
    if tf is None:
        tf = 512 if big_vmem else 256
    tf = max(128, min(_round_up(tf, 128), Fp))
    while Fp % tf:
        tf -= 128

    # M tile: big enough to push weight-stream intensity (~tm FLOP/byte) above
    # the bf16 ridge (v6e ~640, v7x ~300-650, v5e ~240), clamped to the actual
    # row count (decode-sized M) and to the VMEM budget.
    if tm is None:
        tm = 1024 if big_vmem else 512
    tm = min(_round_up(tm, 16), max(16, _round_up(M, 16)))

    def vmem_bytes(tm_):
        x_b = 2 * tm_ * Dp * 2                        # bf16 x, double-buffered
        w_b = 2 * 2 * Dp * tf * 2                     # W1 + W2, double-buffered
        out_b = 2 * tm_ * Dp * out_bytes              # resident output block
        acc_b = 0 if out_bytes == 4 else tm_ * Dp * 4 # f32 scratch (bf16 out)
        bias = 2 * 8 * (tf + Dp) * 4                  # sublane-padded biases
        return x_b + w_b + out_b + acc_b + bias

    while tm > 16 and vmem_bytes(tm) > budget:
        tm = tm - 128 if tm > 128 else max(16, (tm // 2) // 16 * 16)

    # TODO(synk): on v7x (2 TensorCores) cap tm at ~round_up(M/2, 16) once the
    # kernel is compute-bound so the "parallel" M axis spans both cores.
    return tm, tf, vmem_limit


# --------------------------------------------------------------------------
# Wrappers
# --------------------------------------------------------------------------

def prepare_ffn_params(w1, b1, w2, b2):
    """Pad feature dims to lane/MXU-friendly sizes and cast weights to bf16
    ONCE (avoids a hidden per-call HBM pad/cast pass over the weights).
    Weights are stored pre-transposed as (in_features, out_features)."""
    d_model, d_ff = w1.shape
    assert w2.shape == (d_ff, d_model)
    Dp = _round_up(d_model, 256 if d_model > 128 else 128)
    Fp = _round_up(d_ff, 128)
    w1p = jnp.pad(w1, ((0, Dp - d_model), (0, Fp - d_ff))).astype(jnp.bfloat16)
    w2p = jnp.pad(w2, ((0, Fp - d_ff), (0, Dp - d_model))).astype(jnp.bfloat16)
    b1p = jnp.pad(b1.reshape(1, d_ff), ((0, 0), (0, Fp - d_ff))).astype(jnp.float32)
    b2p = jnp.pad(b2.reshape(1, d_model), ((0, 0), (0, Dp - d_model))).astype(jnp.float32)
    return {"w1": w1p, "b1": b1p, "w2": w2p, "b2": b2p,
            "d_model": d_model, "d_ff": d_ff}


@functools.partial(jax.jit,
                   static_argnames=("tm", "tf", "vmem_limit", "out_dtype"))
def _ffn_call(x2d, w1p, b1p, w2p, b2p, *, tm, tf, vmem_limit, out_dtype):
    M, D = x2d.shape
    Dp, Fp = w1p.shape
    Mp = _round_up(M, tm)
    xp = jnp.pad(x2d, ((0, Mp - M), (0, Dp - D))).astype(jnp.bfloat16)

    out_bytes = jnp.dtype(out_dtype).itemsize
    n_m_tiles = Mp // tm
    cost = pl.CostEstimate(
        flops=4 * Mp * Dp * Fp,
        transcendentals=0,
        bytes_accessed=(2 * Dp * Fp * 2) * n_m_tiles     # W1+W2 per M tile
        + Mp * Dp * 2                                     # activation in
        + Mp * Dp * out_bytes,                            # output writeback
    )

    in_specs = [
        pl.BlockSpec((tm, Dp), lambda i, j: (i, 0)),   # x tile (resident over j)
        pl.BlockSpec((Dp, tf), lambda i, j: (0, j)),   # W1 column chunk
        pl.BlockSpec((1, tf), lambda i, j: (0, j)),    # b1 chunk
        pl.BlockSpec((tf, Dp), lambda i, j: (j, 0)),   # W2 row chunk
        pl.BlockSpec((1, Dp), lambda i, j: (0, 0)),    # b2 (full)
    ]
    out_spec = pl.BlockSpec((tm, Dp), lambda i, j: (i, 0))

    if jnp.dtype(out_dtype) == jnp.dtype(jnp.float32):
        kernel, scratch = ffn_kernel_f32_out, []
    else:
        kernel, scratch = ffn_kernel_cast_out, [pltpu.VMEM((tm, Dp), jnp.float32)]

    out = pl.pallas_call(
        kernel,
        out_shape=jax.ShapeDtypeStruct((Mp, Dp), out_dtype),
        grid=(n_m_tiles, Fp // tf),
        in_specs=in_specs,
        out_specs=out_spec,
        scratch_shapes=scratch,
        compiler_params=pltpu.CompilerParams(
            dimension_semantics=("parallel", "arbitrary"),
            vmem_limit_bytes=vmem_limit,
        ),
        cost_estimate=cost,
    )(xp, w1p, b1p, w2p, b2p)

    return out[:M, :D]


def feed_forward(x, params, *, tm=None, tf=None):
    """y = linear2(relu(linear1(x))); dropout is identity (eval mode).

    x: (batch, seq, d_model); params from prepare_ffn_params.
    Matmuls run in bf16 with f32 accumulation (bf16-level accuracy) even for
    f32 inputs; output dtype matches x.dtype.
    """
    B, S, D = x.shape
    assert D == params["d_model"]
    M = B * S
    Dp, Fp = params["w1"].shape
    out_dtype = jnp.float32 if x.dtype == jnp.dtype(jnp.float32) else x.dtype
    tm, tf, vmem_limit = _choose_tiles(M, Dp, Fp,
                                       jnp.dtype(out_dtype).itemsize, tm, tf)
    y = _ffn_call(x.reshape(M, D), params["w1"], params["b1"],
                  params["w2"], params["b2"],
                  tm=tm, tf=tf, vmem_limit=vmem_limit, out_dtype=out_dtype)
    return y.reshape(B, S, D)


def init_params(key, d_model, d_ff):
    # Mirror nn.Linear init: U(-1/sqrt(fan_in), 1/sqrt(fan_in)); weights stored
    # pre-transposed as (in, out) so the kernel computes x @ W.
    k1, k2, k3, k4 = jax.random.split(key, 4)
    lim1 = 1.0 / (d_model ** 0.5)
    lim2 = 1.0 / (d_ff ** 0.5)
    w1 = jax.random.uniform(k1, (d_model, d_ff), jnp.float32, -lim1, lim1)
    b1 = jax.random.uniform(k2, (d_ff,), jnp.float32, -lim1, lim1)
    w2 = jax.random.uniform(k3, (d_ff, d_model), jnp.float32, -lim2, lim2)
    b2 = jax.random.uniform(k4, (d_model,), jnp.float32, -lim2, lim2)
    return w1, b1, w2, b2


if __name__ == "__main__":
    batch, seq, d_model, d_ff = 2, 8, 32, 64
    key = jax.random.PRNGKey(0)
    kx, kp = jax.random.split(key)
    x = jax.random.normal(kx, (batch, seq, d_model), jnp.float32)
    w1, b1, w2, b2 = init_params(kp, d_model, d_ff)

    params = prepare_ffn_params(w1, b1, w2, b2)
    y = feed_forward(x, params)
    y = jax.block_until_ready(y)

    # Pure-JAX f32 reference (eval-mode dropout). Kernel uses bf16 matmul
    # inputs with f32 accumulation -> compare at bf16-level tolerance.
    ref = jnp.maximum(x @ w1 + b1, 0.0) @ w2 + b2
    assert y.shape == ref.shape
    assert y.dtype == ref.dtype
    err = float(jnp.max(jnp.abs(y - ref)))
    assert jnp.allclose(y, ref, atol=3e-2, rtol=3e-2), err
    print("KERNEL_OK")
</pallas_src>

<mosaic_0001>
module attributes {stable_mosaic.version = 11 : i64} {
  func.func @ffn_kernel_f32_out(%arg0: i32, %arg1: i32, %arg2: memref<16x128xbf16, #tpu.memory_space<vmem>>, %arg3: memref<128x128xbf16, #tpu.memory_space<vmem>>, %arg4: memref<1x128xf32, #tpu.memory_space<vmem>>, %arg5: memref<128x128xbf16, #tpu.memory_space<vmem>>, %arg6: memref<1x128xf32, #tpu.memory_space<vmem>>, %arg7: memref<16x128xf32, #tpu.memory_space<vmem>>) attributes {dimension_semantics = [#tpu.dimension_semantics<parallel>, #tpu.dimension_semantics<arbitrary>], iteration_bounds = array<i64: 1, 1>, scalar_prefetch = 0 : i64, scratch_operands = 0 : i64, tpu.core_type = #tpu.core_type<tc>, window_params = [{transform_indices = @transform_0, window_bounds = array<i64: 16, 128>}, {transform_indices = @transform_1, window_bounds = array<i64: 128, 128>}, {transform_indices = @transform_2, window_bounds = array<i64: 1, 128>}, {transform_indices = @transform_3, window_bounds = array<i64: 128, 128>}, {pipeline_mode = #tpu.pipeline_mode<synchronous>, transform_indices = @transform_4, window_bounds = array<i64: 1, 128>}, {transform_indices = @transform_5, window_bounds = array<i64: 16, 128>}]} {
    %c0_i32 = arith.constant 0 : i32
    %0 = arith.cmpi eq, %arg1, %c0_i32 : i32
    %1 = arith.extui %0 : i1 to i32
    %c0_i32_0 = arith.constant 0 : i32
    %2 = arith.cmpi ne, %1, %c0_i32_0 : i32
    scf.if %2 {
      %c0_14 = arith.constant 0 : index
      %c0_15 = arith.constant 0 : index
      %17 = vector.load %arg6[%c0_14, %c0_15] : memref<1x128xf32, #tpu.memory_space<vmem>>, vector<1x128xf32>
      %18 = vector.shape_cast %17 : vector<1x128xf32> to vector<1x128xf32>
      %19 = vector.broadcast %18 : vector<1x128xf32> to vector<16x128xf32>
      %c0_16 = arith.constant 0 : index
      %c0_17 = arith.constant 0 : index
      %20 = vector.load %arg7[%c0_16, %c0_17] : memref<16x128xf32, #tpu.memory_space<vmem>>, vector<16x128xf32>
      tpu.vector_store %arg7[%c0_16, %c0_17], %19 {strides = array<i32>} : memref<16x128xf32, #tpu.memory_space<vmem>>, vector<16x128xf32>,
    } else {
    }
    %c0 = arith.constant 0 : index
    %c0_1 = arith.constant 0 : index
    %3 = vector.load %arg7[%c0, %c0_1] : memref<16x128xf32, #tpu.memory_space<vmem>>, vector<16x128xf32>
    %c0_2 = arith.constant 0 : index
    %c0_3 = arith.constant 0 : index
    %4 = vector.load %arg2[%c0_2, %c0_3] : memref<16x128xbf16, #tpu.memory_space<vmem>>, vector<16x128xbf16>
    %c0_4 = arith.constant 0 : index
    %c0_5 = arith.constant 0 : index
    %5 = vector.load %arg3[%c0_4, %c0_5] : memref<128x128xbf16, #tpu.memory_space<vmem>>, vector<128x128xbf16>
    %cst = arith.constant dense<0.000000e+00> : vector<16x128xf32>
    %6 = tpu.matmul %4, %5, %cst {dimension_numbers = #tpu.dot_dimension_numbers<[1], [0], [0], [1], [0, 0, 1, 1], [], []>} : vector<16x128xbf16>, vector<128x128xbf16>, vector<16x128xf32> -> vector<16x128xf32>
    %c0_6 = arith.constant 0 : index
    %c0_7 = arith.constant 0 : index
    %7 = vector.load %arg4[%c0_6, %c0_7] : memref<1x128xf32, #tpu.memory_space<vmem>>, vector<1x128xf32>
    %8 = vector.broadcast %7 : vector<1x128xf32> to vector<16x128xf32>
    %9 = arith.addf %6, %8 : vector<16x128xf32>
    %cst_8 = arith.constant 0.000000e+00 : f32
    %10 = vector.broadcast %cst_8 : f32 to vector<16x128xf32>
    %11 = arith.maximumf %9, %10 : vector<16x128xf32>
    %12 = arith.truncf %11 : vector<16x128xf32> to vector<16x128xbf16>
    %c0_9 = arith.constant 0 : index
    %c0_10 = arith.constant 0 : index
    %13 = vector.load %arg5[%c0_9, %c0_10] : memref<128x128xbf16, #tpu.memory_space<vmem>>, vector<128x128xbf16>
    %cst_11 = arith.constant dense<0.000000e+00> : vector<16x128xf32>
    %14 = tpu.matmul %12, %13, %cst_11 {dimension_numbers = #tpu.dot_dimension_numbers<[1], [0], [0], [1], [0, 0, 1, 1], [], []>} : vector<16x128xbf16>, vector<128x128xbf16>, vector<16x128xf32> -> vector<16x128xf32>
    %15 = arith.addf %3, %14 : vector<16x128xf32>
    %c0_12 = arith.constant 0 : index
    %c0_13 = arith.constant 0 : index
    %16 = vector.load %arg7[%c0_12, %c0_13] : memref<16x128xf32, #tpu.memory_space<vmem>>, vector<16x128xf32>
    tpu.vector_store %arg7[%c0_12, %c0_13], %15 {strides = array<i32>} : memref<16x128xf32, #tpu.memory_space<vmem>>, vector<16x128xf32>,
    return
  }
  func.func @transform_0(%arg0: i32, %arg1: i32) -> (i32, i32) {
    %c0_i32 = arith.constant 0 : i32
    %c0_i32_0 = arith.constant 0 : i32
    return %arg0, %c0_i32 : i32, i32
  }
  func.func @transform_1(%arg0: i32, %arg1: i32) -> (i32, i32) {
    %c0_i32 = arith.constant 0 : i32
    %c0_i32_0 = arith.constant 0 : i32
    return %c0_i32, %arg1 : i32, i32
  }
  func.func @transform_2(%arg0: i32, %arg1: i32) -> (i32, i32) {
    %c0_i32 = arith.constant 0 : i32
    %c0_i32_0 = arith.constant 0 : i32
    return %c0_i32, %arg1 : i32, i32
  }
  func.func @transform_3(%arg0: i32, %arg1: i32) -> (i32, i32) {
    %c0_i32 = arith.constant 0 : i32
    %c0_i32_0 = arith.constant 0 : i32
    return %arg1, %c0_i32 : i32, i32
  }
  func.func @transform_4(%arg0: i32, %arg1: i32) -> (i32, i32) {
    %c0_i32 = arith.constant 0 : i32
    %c0_i32_0 = arith.constant 0 : i32
    %c0_i32_1 = arith.constant 0 : i32
    return %c0_i32, %c0_i32_0 : i32, i32
  }
  func.func @transform_5(%arg0: i32, %arg1: i32) -> (i32, i32) {
    %c0_i32 = arith.constant 0 : i32
    %c0_i32_0 = arith.constant 0 : i32
    return %arg0, %c0_i32 : i32, i32
  }
}

</mosaic_0001>

<bundles_post_ra>
// kernel: _ffn_call.1
= control target key start
LH: loop header
LB: loop body
LE: loop exit
PB: predicated region body
PF: predicated region fallthrough
CT: control target
= control target key end

     0   :  { %10 = vsyncpa [#allocation3], 0  ;;  %s574_s0 = inlined_call_operand.vmem [shape: bf16[16,128], index: 0, kind: input, shape index: {}]   ;;  %s575_s1 = inlined_call_operand.hbm [shape: bf16[128,128], index: 1, kind: input, shape index: {}]   ;;  %s576_s2 = inlined_call_operand.vmem [shape: f32[1,128], index: 2, kind: input, shape index: {}]   ;;  %s577_s3 = inlined_call_operand.hbm [shape: bf16[128,128], index: 3, kind: input, shape index: {}]   ;;  %s578_s4 = inlined_call_operand.vmem [shape: f32[1,128], index: 4, kind: input, shape index: {}]   ;;  %s579_s5 = inlined_call_operand.hbm [shape: f32[16,128], index: 5, kind: output, shape index: {}]  }
   0x1   :  { %11 = vsyncpa [#allocation6], 0 }
   0x2   :  { %12 = vsyncpa [#allocation4], 0  ;;  %s490_s18 = smov [#allocation2]   ;;  %s418_s22 = scalar_lea.hbm %s575_s1, 1024 }
   0x3   :  { %s20_s19 = sshll.u32 %s490_s18, 4  ;;  %p419_p0 = scmp.ne.s32.totalorder %s575_s1, %s418_s22  ;;  %s21_s19 = int_to_ptr.vmem [resolvable:$true] %s20_s19 }
   0x4   :  { %p422_p1 = scmp.lt.u32.totalorder %s418_s22, %s575_s1 }
   0x6   :  { %p424_p2 = pnand %p422_p1, %p419_p0 }
   0x8   :  { %427 = shalt.err (!%p424_p2)
}
   0x9   :  { %s428_s27 = scalar_lea.vmem %s21_s19, 1024  ;;  %p433_p4 = scmp.lt.s32.totalorder %s21_s19, %s21_s19 }
   0xa   :  { %p429_p3 = scmp.ne.s32.totalorder %s21_s19, %s428_s27  ;;  %p434_p5 = scmp.lt.s32.totalorder %s428_s27, %s428_s27 }
   0xc   :  { %p435_p6 = por %p434_p5, %p433_p4 }
   0xe   :  { %p436_p7 = pnand %p435_p6, %p429_p3 }
  0x10   :  { %439 = shalt.err (!%p436_p7)
}
  0x11   :  { %s491_s28 = smov 64   ;;  %s492_s29 = smov 4  }
  0x12   :  { %26 = dma.hbm_to_vmem [thread:$0]  %s575_s1, 1024, %s21_s19, [#allocation3], %s491_s28, %s491_s28, %s492_s29  }
  0x13   :  { %s493_s7 = smov [#allocation5]   ;;  %s440_s11 = scalar_lea.hbm %s577_s3, 1024 }
  0x14   :  { %s34_s8 = sshll.u32 %s493_s7, 4  ;;  %p441_p8 = scmp.ne.s32.totalorder %s577_s3, %s440_s11  ;;  %s35_s8 = int_to_ptr.vmem [resolvable:$true] %s34_s8 }
  0x15   :  { %p444_p9 = scmp.lt.u32.totalorder %s440_s11, %s577_s3 }
  0x17   :  { %p446_p10 = pnand %p444_p9, %p441_p8 }
  0x19   :  { %449 = shalt.err (!%p446_p10)
}
  0x1a   :  { %s450_s16 = scalar_lea.vmem %s35_s8, 1024  ;;  %p455_p12 = scmp.lt.s32.totalorder %s35_s8, %s35_s8 }
  0x1b   :  { %p451_p11 = scmp.ne.s32.totalorder %s35_s8, %s450_s16  ;;  %p456_p13 = scmp.lt.s32.totalorder %s450_s16, %s450_s16 }
  0x1d   :  { %p457_p0 = por %p456_p13, %p455_p12 }
  0x1f   :  { %p458_p1 = pnand %p457_p0, %p451_p11 }
  0x21   :  { %461 = shalt.err (!%p458_p1)
}
  0x22   :  { %40 = dma.hbm_to_vmem [thread:$0]  %s577_s3, 1024, %s35_s8, [#allocation6], %s491_s28, %s491_s28, %s492_s29  }
  0x23   :  { %484 = dma.done.wait [#allocation3], 1024  }
  0x24   :  { %485 = vsyncadd [#allocation3], 4294966272 }
  0x25   :  { %486 = dma.done.wait [#allocation6], 1024  }
  0x26   :  { %487 = vsyncadd [#allocation6], 4294966272  ;;  %v494_v0 = vmov 0.0   ;;  %vm495_vm0 = vmmov 0   ;;  %v401_v1 = vld [vmem:[#allocation2] sm:$0xff]   ;;  %v402_v2 = vld [vmem:[#allocation2 + $0x8] sm:$0xff]  }
  0x27   :  { %352 = vmatprep.subr.bf16.mxu0 %v494_v0  ;;  %368 = vmatprep.mubr.msk.bf16.mxu0 %vm495_vm0, %v494_v0  ;;  %v403_v3 = vld [vmem:[#allocation2 + $0x10] sm:$0xff]   ;;  %v410_v4 = vld [vmem:[#allocation5] sm:$0xff]   ;;  %v404_v5 = vld [vmem:[#allocation2 + $0x18] sm:$0xff]   ;;  %s496_s22 = smov [#allocation7]  }
  0x28   :  { %372 = vmatprep.subr.bf16.mxu1 %v494_v0  ;;  %388 = vmatprep.mubr.msk.bf16.mxu1 %vm495_vm0, %v494_v0  ;;  %v411_v6 = vld [vmem:[#allocation5 + $0x8] sm:$0xff]   ;;  %v405_v7 = vld [vmem:[#allocation2 + $0x20] sm:$0xff]   ;;  %v412_v8 = vld [vmem:[#allocation5 + $0x10] sm:$0xff]   ;;  %s302_s23 = sshll.u32 %s496_s22, 4  ;;  %s303_s23 = int_to_ptr.vmem [resolvable:$true] %s302_s23 }
  0x29   :  { %353 = vmatpush3.bf16.msra.mxu0 %v401_v1  ;;  %373 = vmatpush3.bf16.msra.mxu1 %v410_v4  ;;  %v406_v9 = vld [vmem:[#allocation2 + $0x28] sm:$0xff]   ;;  %v413_v10 = vld [vmem:[#allocation5 + $0x18] sm:$0xff]   ;;  %v407_v11 = vld [vmem:[#allocation2 + $0x30] sm:$0xff]   ;;  %p467_p3 = scmp.lt.s32.totalorder %s303_s23, %s303_s23 }
  0x2a   :  { %354 = vmatprep.subr.bf16.mxu0 %v494_v0  ;;  %374 = vmatprep.subr.bf16.mxu1 %v494_v0  ;;  %v414_v12 = vld [vmem:[#allocation5 + $0x20] sm:$0xff]   ;;  %v408_v13 = vld [vmem:[#allocation2 + $0x38] sm:$0xff]   ;;  %v415_v14 = vld [vmem:[#allocation5 + $0x28] sm:$0xff]  }
  0x2b   :  { %v409_v15 = vld [vmem:[%s574_s0] sm:$0xff]   ;;  %v417_v17 = vld [vmem:[#allocation5 + $0x38] sm:$0xff]  }
  0x2c   :  { %v416_v16 = vld [vmem:[#allocation5 + $0x30] sm:$0xff]  }
  0x2d   :  { %355 = vmatpush3.bf16.msra.mxu0 %v402_v2  ;;  %375 = vmatpush3.bf16.msra.mxu1 %v411_v6  ;;  %v316_v18 = vld [vmem:[%s576_s2] ss:$0 sm:$0xff]  ;;  %s462_s2 = scalar_lea.vmem %s303_s23, 256 }
  0x2e   :  { %356 = vmatprep.subr.bf16.mxu0 %v494_v0  ;;  %376 = vmatprep.subr.bf16.mxu1 %v494_v0  ;;  %v315_v28 = vld [vmem:[%s578_s4] ss:$0 sm:$0xff]  ;;  %p463_p2 = scmp.ne.s32.totalorder %s303_s23, %s462_s2  ;;  %p468_p4 = scmp.lt.s32.totalorder %s462_s2, %s462_s2 }
  0x30   :  { %p469_p5 = por %p468_p4, %p467_p3 }
  0x31   :  { %357 = vmatpush3.bf16.msra.mxu0 %v403_v3  ;;  %377 = vmatpush3.bf16.msra.mxu1 %v412_v8 }
  0x32   :  { %358 = vmatprep.subr.bf16.mxu0 %v494_v0  ;;  %378 = vmatprep.subr.bf16.mxu1 %v494_v0  ;;  %p470_p6 = pnand %p469_p5, %p463_p2 }
  0x35   :  { %359 = vmatpush3.bf16.msra.mxu0 %v404_v5  ;;  %379 = vmatpush3.bf16.msra.mxu1 %v413_v10 }
  0x36   :  { %360 = vmatprep.subr.bf16.mxu0 %v494_v0  ;;  %380 = vmatprep.subr.bf16.mxu1 %v494_v0 }
  0x39   :  { %361 = vmatpush3.bf16.msra.mxu0 %v405_v7  ;;  %381 = vmatpush3.bf16.msra.mxu1 %v414_v12 }
  0x3a   :  { %362 = vmatprep.subr.bf16.mxu0 %v494_v0  ;;  %382 = vmatprep.subr.bf16.mxu1 %v494_v0 }
  0x3d   :  { %363 = vmatpush3.bf16.msra.mxu0 %v406_v9  ;;  %383 = vmatpush3.bf16.msra.mxu1 %v415_v14 }
  0x3e   :  { %364 = vmatprep.subr.bf16.mxu0 %v494_v0  ;;  %384 = vmatprep.subr.bf16.mxu1 %v494_v0 }
  0x41   :  { %365 = vmatpush3.bf16.msra.mxu0 %v407_v11  ;;  %385 = vmatpush3.bf16.msra.mxu1 %v416_v16 }
  0x42   :  { %366 = vmatprep.subr.bf16.mxu0 %v494_v0  ;;  %386 = vmatprep.subr.bf16.mxu1 %v494_v0 }
  0x45   :  { %367 = vmatpush3.bf16.msra.mxu0 %v408_v13  ;;  %387 = vmatpush3.bf16.msra.mxu1 %v417_v17 }
  0x48   :  { %369 = vmatmul.mubr.bf16.vlgmr.msra.gmra.mrb[0].mxu0 %v409_v15 }
 0x11b   :  { %v178_v19 = vpop.f32.mrb[0].mxu0 }
 0x11c   :  { %v179_v20 = vadd.f32 %v316_v18, %v178_v19  ;;  %v370_v21 = vpop.f32.mrb[1].mxu0 }
 0x11d   :  { %v181_v22 = vpop.f32.mrb[2].mxu0 }
 0x11e   :  { %v182_v23 = vadd.f32 %v316_v18, %v181_v22  ;;  %v371_v24 = vpop.f32.mrb[3].mxu0  ;;  %v185_v25 = vmax.f32 %v179_v20, 0.0 }
 0x120   :  { %v186_v26 = vmax.f32 %v182_v23, 0.0 }
 0x122   :  { %v187_v27 = vpack.c.bf16 %v186_v26, %v185_v25 }
 0x124   :  { %389 = vmatmul.mubr.bf16.vlgmr.msra.gmra.mrb[0].mxu1 %v187_v27 }
 0x1f7   :  { %v286_v29 = vpop.f32.mrb[0].mxu1 }
 0x1f8   :  { %v293_v30 = vadd.f32 %v315_v28, %v286_v29  ;;  %v390_v31 = vpop.f32.mrb[1].mxu1 }
 0x1f9   :  { %v289_v32 = vpop.f32.mrb[2].mxu1 }
 0x1fa   :  { %295 = vst [vmem:[#allocation7] sm:$0xff] %v293_v30  ;;  %v294_v33 = vadd.f32 %v315_v28, %v289_v32  ;;  %v391_v34 = vpop.f32.mrb[3].mxu1 }
 0x1fc   :  { %296 = vst [vmem:[#allocation7 + $0x8] sm:$0xff] %v294_v33 }
 0x1fd   :  { %473 = shalt.err (!%p470_p6)
}
 0x1fe   :  { %s474_s25 = scalar_lea.hbm %s579_s5, 256 }
 0x1ff   :  { %p475_p7 = scmp.ne.s32.totalorder %s579_s5, %s474_s25  ;;  %p478_p8 = scmp.lt.u32.totalorder %s474_s25, %s579_s5 }
 0x201   :  { %p480_p9 = pnand %p478_p8, %p475_p7 }
 0x203   :  { %483 = shalt.err (!%p480_p9)
}
 0x204   :  { %s497_s30 = smov 128   ;;  %s498_s6 = smov 8  }
 0x205   :  { %308 = dma.vmem_to_hbm [thread:$0]  %s303_s23, 256, %s579_s5, [#allocation4], %s497_s30, %s497_s30, %s498_s6  }
 0x206   :  { %488 = dma.done.wait [#allocation4], 256  }
 0x207   :  { %489 = vsyncadd [#allocation4], 4294967040 }
 0x208   :  { %312 = vsyncpa [#allocation3], 1 }
 0x209   :  { %313 = vsyncpa [#allocation6], 1 }
 0x20a   :  { %314 = vsyncpa [#allocation4], 1 }

</bundles_post_ra>
